<compile_context>
chip_gen: v5e
topology: v5e:2x2
jax: 0.10.0
libtpu: 0.0.40
codegen_flags: <defaults>
</compile_context>

<pallas_src>
import functools
import math

import jax
import jax.numpy as jnp
from jax.experimental import pallas as pl
from jax.experimental.pallas import tpu as pltpu

LANE = 128
SUBLANE = 8


def _round_up(n, m):
    return ((n + m - 1) // m) * m


# ---------------------------------------------------------------------------
# Fused MLP kernel.
#   refs = (x_ref, w0, b0, w1, b1, ..., w_{L-1}, b_{L-1}, o_ref)
#   x_ref : (TB, P0)  f32 activation tile (streams over the batch grid axis)
#   w_l   : (Pi, Po)  bf16, pre-transposed + zero-padded, VMEM-resident
#   b_l   : (1,  Po)  f32, zero-padded
#   o_ref : (TB, PL)  f32
# All layers run back-to-back on the MXU (f32 accumulation); the inter-layer
# activation is carried in vregs (tiles here are small).
# ---------------------------------------------------------------------------
def _fused_mlp_kernel(*refs):
    x_ref, o_ref = refs[0], refs[-1]
    layer_refs = refs[1:-1]
    n_layers = len(layer_refs) // 2

    act = x_ref[...]                                       # f32 (TB, P0)
    for l in range(n_layers):                              # static unroll
        w_ref = layer_refs[2 * l]
        b_ref = layer_refs[2 * l + 1]
        y = jnp.dot(act.astype(w_ref.dtype), w_ref[...],
                    preferred_element_type=jnp.float32)    # bf16 x bf16 -> f32 acc
        y = y + b_ref[...]                                  # (1, Po) broadcast, f32
        if l < n_layers - 1:                                # ReLU on all but out_layer
            y = jnp.maximum(y, 0.0)
        act = y
    o_ref[...] = act.astype(o_ref.dtype)
    # TODO(synk): for very wide layers (Po >= ~512) carry `act` in a VMEM scratch
    # instead of vregs, and stream weights layer-by-layer if the resident bf16 slab
    # would exceed the v7x 64 MiB VMEM budget.


def _fused_mlp_call(x_pad, params, tb):
    Bp, P0 = x_pad.shape
    PL = params[-2].shape[1]                 # out width of the last (padded) layer
    num_tiles = Bp // tb

    in_specs = [pl.BlockSpec((tb, P0), lambda i: (i, 0))]
    for p in params:                         # weights & biases: full block, constant
        in_specs.append(pl.BlockSpec(p.shape, lambda i: (0, 0)))  # index -> resident
    out_spec = pl.BlockSpec((tb, PL), lambda i: (i, 0))

    # VMEM budget from actual slab sizes: resident params + double-buffered I/O tiles
    # + in-kernel f32 temporaries, with 2x headroom, clamped to 48 MiB (v7x-safe).
    param_bytes = sum(math.prod(p.shape) * p.dtype.itemsize for p in params)
    io_bytes = 2 * (tb * P0 + tb * PL) * 4
    widest = max(p.shape[-1] for p in params)
    tmp_bytes = 4 * tb * widest * 4
    vmem_limit = int(min(max(2 * (param_bytes + io_bytes + tmp_bytes), 8 << 20),
                         48 << 20))

    return pl.pallas_call(
        _fused_mlp_kernel,
        out_shape=jax.ShapeDtypeStruct((Bp, PL), jnp.float32),
        grid=(num_tiles,),
        in_specs=in_specs,
        out_specs=out_spec,
        compiler_params=pltpu.CompilerParams(
            dimension_semantics=("parallel",),   # batch tiles shard across v7x TCs
            vmem_limit_bytes=vmem_limit,
        ),
    )(x_pad, *params)


@functools.partial(jax.jit, static_argnames=("out_features",))
def _forward_jit(x, params, *, out_features):
    B, in_f = x.shape
    P0 = params[0].shape[0]

    # Batch tiling: large batches get 256-row tiles (fills the MXU, pipelines DMA),
    # tiny batches run as one tile.
    if B > 256:
        tb = 256
    else:
        tb = _round_up(max(B, SUBLANE), SUBLANE)
    Bp = _round_up(B, tb)

    x_pad = jnp.pad(x, ((0, Bp - B), (0, P0 - in_f)))   # lax.pad: no extra HBM copy
    y_pad = _fused_mlp_call(x_pad, params, tb)
    return y_pad[:B, :out_features]


# ---------------------------------------------------------------------------
# Parameter init (mimics torch.nn.Linear default uniform +-1/sqrt(in_f)).
# ---------------------------------------------------------------------------
def init_linear_params(key, in_f, out_f, dtype=jnp.float32):
    kw, kb = jax.random.split(key)
    bound = 1.0 / math.sqrt(in_f)
    w = jax.random.uniform(kw, (out_f, in_f), dtype, minval=-bound, maxval=bound)
    b = jax.random.uniform(kb, (out_f,), dtype, minval=-bound, maxval=bound)
    return w, b


class DynamicModelPallas:
    """JAX/Pallas port of dynamicModel with a single fused forward kernel."""

    def __init__(self, in_in, in_out, out_in, out_out, h_ins=(), h_outs=(),
                 *, key, dtype=jnp.float32):
        h_ins, h_outs = list(h_ins), list(h_outs)

        # Layer (in_f, out_f) pairs exactly as the torch module builds them.
        dims = []
        first_out = h_ins[0] if len(h_ins) else in_out
        dims.append((in_in, first_out))                       # in_layer
        for i in range(len(h_ins)):
            dims.append((h_ins[i], h_outs[i]))                # hidden layers
        last_in = h_outs[-1] if len(h_outs) else out_in
        dims.append((last_in, out_out))                       # out_layer
        for (_, fo), (fi, _) in zip(dims[:-1], dims[1:]):
            assert fo == fi, "inconsistent layer dims (torch forward would fail too)"

        keys = jax.random.split(key, len(dims))
        self.layers = [init_linear_params(k, fi, fo, dtype)
                       for k, (fi, fo) in zip(keys, dims)]
        self.dims = dims
        self.out_features = out_out

        # One-time packing: per-layer padding to (round_up(fi,128), round_up(fo,128)),
        # pre-transposed, weights in bf16 (f32 accumulation in-kernel), biases f32.
        params = []
        for (w, b), (fi, fo) in zip(self.layers, dims):
            pi, po = _round_up(fi, LANE), _round_up(fo, LANE)
            wt = jnp.zeros((pi, po), jnp.bfloat16).at[:fi, :fo].set(
                w.T.astype(jnp.bfloat16))
            bp = jnp.zeros((1, po), jnp.float32).at[0, :fo].set(b.astype(jnp.float32))
            params += [wt, bp]
        self.params = tuple(params)

    def __call__(self, x):
        return _forward_jit(x, self.params, out_features=self.out_features)


def reference_forward_f32(model, x):
    """Pure-JAX f32 reference matching torch semantics exactly (unpadded params)."""
    w, b = model.layers[0]
    y = jax.nn.relu(x @ w.T + b)
    for w, b in model.layers[1:-1]:
        y = jax.nn.relu(y @ w.T + b)
    w, b = model.layers[-1]
    return y @ w.T + b


def reference_forward_bf16(model, x):
    """Pure-JAX reference reproducing the kernel's numerics (bf16 dot, f32 accum)."""
    act = x.astype(jnp.float32)
    n = len(model.layers)
    for l, (w, b) in enumerate(model.layers):
        y = jnp.dot(act.astype(jnp.bfloat16), w.T.astype(jnp.bfloat16),
                    preferred_element_type=jnp.float32) + b.astype(jnp.float32)
        if l < n - 1:
            y = jax.nn.relu(y)
        act = y
    return act


if __name__ == "__main__":
    key = jax.random.PRNGKey(0)
    k_model, k_x = jax.random.split(key)

    # Shapes consistent with the module's constructor:
    # dynamicModel(in_in=32, in_out=24, out_in=24, out_out=16, h_ins=[64,48], h_outs=[48,64])
    batch, in_in, out_out = 8, 32, 16
    h_ins, h_outs = [64, 48], [48, 64]

    model = DynamicModelPallas(
        in_in=in_in, in_out=24, out_in=24, out_out=out_out,
        h_ins=h_ins, h_outs=h_outs, key=k_model,
    )

    x = jax.random.normal(k_x, (batch, in_in), dtype=jnp.float32)

    out = jax.block_until_ready(model(x))
    assert out.shape == (batch, out_out)

    # Tight check against a reference that mirrors the kernel's bf16/f32 numerics.
    ref_bf16 = reference_forward_bf16(model, x)
    assert jnp.allclose(out, ref_bf16, atol=2e-3, rtol=2e-2), (
        float(jnp.max(jnp.abs(out - ref_bf16))))
    # Looser check against the exact torch-style f32 reference (bf16 weight quant).
    ref_f32 = reference_forward_f32(model, x)
    assert jnp.allclose(out, ref_f32, atol=5e-2, rtol=5e-2), (
        float(jnp.max(jnp.abs(out - ref_f32))))

    print("KERNEL_OK")
</pallas_src>

<mosaic_0001>
module attributes {stable_mosaic.version = 11 : i64} {
  func.func @_fused_mlp_kernel(%arg0: i32, %arg1: memref<8x128xf32, #tpu.memory_space<vmem>>, %arg2: memref<128x128xbf16, #tpu.memory_space<vmem>>, %arg3: memref<1x128xf32, #tpu.memory_space<vmem>>, %arg4: memref<128x128xbf16, #tpu.memory_space<vmem>>, %arg5: memref<1x128xf32, #tpu.memory_space<vmem>>, %arg6: memref<128x128xbf16, #tpu.memory_space<vmem>>, %arg7: memref<1x128xf32, #tpu.memory_space<vmem>>, %arg8: memref<128x128xbf16, #tpu.memory_space<vmem>>, %arg9: memref<1x128xf32, #tpu.memory_space<vmem>>, %arg10: memref<8x128xf32, #tpu.memory_space<vmem>>) attributes {dimension_semantics = [#tpu.dimension_semantics<parallel>], iteration_bounds = array<i64: 1>, scalar_prefetch = 0 : i64, scratch_operands = 0 : i64, tpu.core_type = #tpu.core_type<tc>, window_params = [{transform_indices = @transform_0, window_bounds = array<i64: 8, 128>}, {pipeline_mode = #tpu.pipeline_mode<synchronous>, transform_indices = @transform_1, window_bounds = array<i64: 128, 128>}, {pipeline_mode = #tpu.pipeline_mode<synchronous>, transform_indices = @transform_2, window_bounds = array<i64: 1, 128>}, {pipeline_mode = #tpu.pipeline_mode<synchronous>, transform_indices = @transform_3, window_bounds = array<i64: 128, 128>}, {pipeline_mode = #tpu.pipeline_mode<synchronous>, transform_indices = @transform_4, window_bounds = array<i64: 1, 128>}, {pipeline_mode = #tpu.pipeline_mode<synchronous>, transform_indices = @transform_5, window_bounds = array<i64: 128, 128>}, {pipeline_mode = #tpu.pipeline_mode<synchronous>, transform_indices = @transform_6, window_bounds = array<i64: 1, 128>}, {pipeline_mode = #tpu.pipeline_mode<synchronous>, transform_indices = @transform_7, window_bounds = array<i64: 128, 128>}, {pipeline_mode = #tpu.pipeline_mode<synchronous>, transform_indices = @transform_8, window_bounds = array<i64: 1, 128>}, {transform_indices = @transform_9, window_bounds = array<i64: 8, 128>}]} {
    %c0 = arith.constant 0 : index
    %c0_0 = arith.constant 0 : index
    %0 = vector.load %arg1[%c0, %c0_0] : memref<8x128xf32, #tpu.memory_space<vmem>>, vector<8x128xf32>
    %1 = arith.truncf %0 : vector<8x128xf32> to vector<8x128xbf16>
    %c0_1 = arith.constant 0 : index
    %c0_2 = arith.constant 0 : index
    %2 = vector.load %arg2[%c0_1, %c0_2] : memref<128x128xbf16, #tpu.memory_space<vmem>>, vector<128x128xbf16>
    %cst = arith.constant dense<0.000000e+00> : vector<8x128xf32>
    %3 = tpu.matmul %1, %2, %cst {dimension_numbers = #tpu.dot_dimension_numbers<[1], [0], [0], [1], [0, 0, 1, 1], [], []>} : vector<8x128xbf16>, vector<128x128xbf16>, vector<8x128xf32> -> vector<8x128xf32>
    %c0_3 = arith.constant 0 : index
    %c0_4 = arith.constant 0 : index
    %4 = vector.load %arg3[%c0_3, %c0_4] : memref<1x128xf32, #tpu.memory_space<vmem>>, vector<1x128xf32>
    %5 = vector.broadcast %4 : vector<1x128xf32> to vector<8x128xf32>
    %6 = arith.addf %3, %5 : vector<8x128xf32>
    %cst_5 = arith.constant 0.000000e+00 : f32
    %7 = vector.broadcast %cst_5 : f32 to vector<8x128xf32>
    %8 = arith.maximumf %6, %7 : vector<8x128xf32>
    %9 = arith.truncf %8 : vector<8x128xf32> to vector<8x128xbf16>
    %c0_6 = arith.constant 0 : index
    %c0_7 = arith.constant 0 : index
    %10 = vector.load %arg4[%c0_6, %c0_7] : memref<128x128xbf16, #tpu.memory_space<vmem>>, vector<128x128xbf16>
    %cst_8 = arith.constant dense<0.000000e+00> : vector<8x128xf32>
    %11 = tpu.matmul %9, %10, %cst_8 {dimension_numbers = #tpu.dot_dimension_numbers<[1], [0], [0], [1], [0, 0, 1, 1], [], []>} : vector<8x128xbf16>, vector<128x128xbf16>, vector<8x128xf32> -> vector<8x128xf32>
    %c0_9 = arith.constant 0 : index
    %c0_10 = arith.constant 0 : index
    %12 = vector.load %arg5[%c0_9, %c0_10] : memref<1x128xf32, #tpu.memory_space<vmem>>, vector<1x128xf32>
    %13 = vector.broadcast %12 : vector<1x128xf32> to vector<8x128xf32>
    %14 = arith.addf %11, %13 : vector<8x128xf32>
    %cst_11 = arith.constant 0.000000e+00 : f32
    %15 = vector.broadcast %cst_11 : f32 to vector<8x128xf32>
    %16 = arith.maximumf %14, %15 : vector<8x128xf32>
    %17 = arith.truncf %16 : vector<8x128xf32> to vector<8x128xbf16>
    %c0_12 = arith.constant 0 : index
    %c0_13 = arith.constant 0 : index
    %18 = vector.load %arg6[%c0_12, %c0_13] : memref<128x128xbf16, #tpu.memory_space<vmem>>, vector<128x128xbf16>
    %cst_14 = arith.constant dense<0.000000e+00> : vector<8x128xf32>
    %19 = tpu.matmul %17, %18, %cst_14 {dimension_numbers = #tpu.dot_dimension_numbers<[1], [0], [0], [1], [0, 0, 1, 1], [], []>} : vector<8x128xbf16>, vector<128x128xbf16>, vector<8x128xf32> -> vector<8x128xf32>
    %c0_15 = arith.constant 0 : index
    %c0_16 = arith.constant 0 : index
    %20 = vector.load %arg7[%c0_15, %c0_16] : memref<1x128xf32, #tpu.memory_space<vmem>>, vector<1x128xf32>
    %21 = vector.broadcast %20 : vector<1x128xf32> to vector<8x128xf32>
    %22 = arith.addf %19, %21 : vector<8x128xf32>
    %cst_17 = arith.constant 0.000000e+00 : f32
    %23 = vector.broadcast %cst_17 : f32 to vector<8x128xf32>
    %24 = arith.maximumf %22, %23 : vector<8x128xf32>
    %25 = arith.truncf %24 : vector<8x128xf32> to vector<8x128xbf16>
    %c0_18 = arith.constant 0 : index
    %c0_19 = arith.constant 0 : index
    %26 = vector.load %arg8[%c0_18, %c0_19] : memref<128x128xbf16, #tpu.memory_space<vmem>>, vector<128x128xbf16>
    %cst_20 = arith.constant dense<0.000000e+00> : vector<8x128xf32>
    %27 = tpu.matmul %25, %26, %cst_20 {dimension_numbers = #tpu.dot_dimension_numbers<[1], [0], [0], [1], [0, 0, 1, 1], [], []>} : vector<8x128xbf16>, vector<128x128xbf16>, vector<8x128xf32> -> vector<8x128xf32>
    %c0_21 = arith.constant 0 : index
    %c0_22 = arith.constant 0 : index
    %28 = vector.load %arg9[%c0_21, %c0_22] : memref<1x128xf32, #tpu.memory_space<vmem>>, vector<1x128xf32>
    %29 = vector.broadcast %28 : vector<1x128xf32> to vector<8x128xf32>
    %30 = arith.addf %27, %29 : vector<8x128xf32>
    %c0_23 = arith.constant 0 : index
    %c0_24 = arith.constant 0 : index
    %31 = vector.load %arg10[%c0_23, %c0_24] : memref<8x128xf32, #tpu.memory_space<vmem>>, vector<8x128xf32>
    tpu.vector_store %arg10[%c0_23, %c0_24], %30 {strides = array<i32>} : memref<8x128xf32, #tpu.memory_space<vmem>>, vector<8x128xf32>,
    return
  }
  func.func @transform_0(%arg0: i32) -> (i32, i32) {
    %c0_i32 = arith.constant 0 : i32
    %c0_i32_0 = arith.constant 0 : i32
    return %arg0, %c0_i32 : i32, i32
  }
  func.func @transform_1(%arg0: i32) -> (i32, i32) {
    %c0_i32 = arith.constant 0 : i32
    %c0_i32_0 = arith.constant 0 : i32
    %c0_i32_1 = arith.constant 0 : i32
    return %c0_i32, %c0_i32_0 : i32, i32
  }
  func.func @transform_2(%arg0: i32) -> (i32, i32) {
    %c0_i32 = arith.constant 0 : i32
    %c0_i32_0 = arith.constant 0 : i32
    %c0_i32_1 = arith.constant 0 : i32
    return %c0_i32, %c0_i32_0 : i32, i32
  }
  func.func @transform_3(%arg0: i32) -> (i32, i32) {
    %c0_i32 = arith.constant 0 : i32
    %c0_i32_0 = arith.constant 0 : i32
    %c0_i32_1 = arith.constant 0 : i32
    return %c0_i32, %c0_i32_0 : i32, i32
  }
  func.func @transform_4(%arg0: i32) -> (i32, i32) {
    %c0_i32 = arith.constant 0 : i32
    %c0_i32_0 = arith.constant 0 : i32
    %c0_i32_1 = arith.constant 0 : i32
    return %c0_i32, %c0_i32_0 : i32, i32
  }
  func.func @transform_5(%arg0: i32) -> (i32, i32) {
    %c0_i32 = arith.constant 0 : i32
    %c0_i32_0 = arith.constant 0 : i32
    %c0_i32_1 = arith.constant 0 : i32
    return %c0_i32, %c0_i32_0 : i32, i32
  }
  func.func @transform_6(%arg0: i32) -> (i32, i32) {
    %c0_i32 = arith.constant 0 : i32
    %c0_i32_0 = arith.constant 0 : i32
    %c0_i32_1 = arith.constant 0 : i32
    return %c0_i32, %c0_i32_0 : i32, i32
  }
  func.func @transform_7(%arg0: i32) -> (i32, i32) {
    %c0_i32 = arith.constant 0 : i32
    %c0_i32_0 = arith.constant 0 : i32
    %c0_i32_1 = arith.constant 0 : i32
    return %c0_i32, %c0_i32_0 : i32, i32
  }
  func.func @transform_8(%arg0: i32) -> (i32, i32) {
    %c0_i32 = arith.constant 0 : i32
    %c0_i32_0 = arith.constant 0 : i32
    %c0_i32_1 = arith.constant 0 : i32
    return %c0_i32, %c0_i32_0 : i32, i32
  }
  func.func @transform_9(%arg0: i32) -> (i32, i32) {
    %c0_i32 = arith.constant 0 : i32
    %c0_i32_0 = arith.constant 0 : i32
    return %arg0, %c0_i32 : i32, i32
  }
}

</mosaic_0001>

<bundles_post_ra>
// kernel: _forward_jit.1
= control target key start
LH: loop header
LB: loop body
LE: loop exit
PB: predicated region body
PF: predicated region fallthrough
CT: control target
= control target key end

     0   :  { %14 = vsyncpa [#allocation3], 0  ;;  %s834_s0 = inlined_call_operand.vmem [shape: f32[8,128], index: 0, kind: input, shape index: {}]   ;;  %s835_s1 = inlined_call_operand.hbm [shape: bf16[128,128], index: 1, kind: input, shape index: {}]   ;;  %s836_s2 = inlined_call_operand.vmem [shape: f32[1,128], index: 2, kind: input, shape index: {}]   ;;  %s837_s3 = inlined_call_operand.hbm [shape: bf16[128,128], index: 3, kind: input, shape index: {}]   ;;  %s838_s4 = inlined_call_operand.vmem [shape: f32[1,128], index: 4, kind: input, shape index: {}]   ;;  %s839_s5 = inlined_call_operand.hbm [shape: bf16[128,128], index: 5, kind: input, shape index: {}]   ;;  %s840_s6 = inlined_call_operand.vmem [shape: f32[1,128], index: 6, kind: input, shape index: {}]   ;;  %s841_s7 = inlined_call_operand.hbm [shape: bf16[128,128], index: 7, kind: input, shape index: {}]   ;;  %s842_s8 = inlined_call_operand.vmem [shape: f32[1,128], index: 8, kind: input, shape index: {}]   ;;  %s843_s9 = inlined_call_operand.hbm [shape: f32[8,128], index: 9, kind: output, shape index: {}]  }
   0x1   :  { %15 = vsyncpa [#allocation6], 0 }
   0x2   :  { %16 = vsyncpa [#allocation9], 0 }
   0x3   :  { %17 = vsyncpa [#allocation4], 0  ;;  %s39_s11 = sshll.u32 %s837_s3, 4  ;;  %s747_s12 = smov [#allocation5]   ;;  %s40_s11 = int_to_ptr.hbm [resolvable:$true] %s39_s11 }
   0x4   :  { %s41_s13 = sshll.u32 %s747_s12, 4  ;;  %s24_s16 = sshll.u32 %s835_s1, 4  ;;  %s42_s13 = int_to_ptr.vmem [resolvable:$true] %s41_s13  ;;  %s25_s16 = int_to_ptr.hbm [resolvable:$true] %s24_s16 }
   0x5   :  { %s748_s17 = smov 64   ;;  %s749_s18 = smov 4  }
   0x6   :  { %47 = dma.hbm_to_vmem [thread:$0]  %s40_s11, 1024, %s42_s13, [#allocation6], %s748_s17, %s748_s17, %s749_s18  }
   0x7   :  { %s750_s19 = smov [#allocation2]   ;;  %s54_s23 = sshll.u32 %s839_s5, 4  ;;  %s55_s23 = int_to_ptr.hbm [resolvable:$true] %s54_s23 }
   0x8   :  { %s26_s20 = sshll.u32 %s750_s19, 4  ;;  %s69_s25 = sshll.u32 %s841_s7, 4  ;;  %s27_s20 = int_to_ptr.vmem [resolvable:$true] %s26_s20  ;;  %s70_s25 = int_to_ptr.hbm [resolvable:$true] %s69_s25 }
   0x9   :  { %32 = dma.hbm_to_vmem [thread:$0]  %s25_s16, 1024, %s27_s20, [#allocation3], %s748_s17, %s748_s17, %s749_s18  }
   0xa   :  { %s751_s26 = smov [#allocation7]   ;;  %s752_s1 = smov [#allocation8]  }
   0xb   :  { %s56_s27 = sshll.u32 %s751_s26, 4  ;;  %s71_s28 = sshll.u32 %s752_s1, 4  ;;  %s57_s27 = int_to_ptr.vmem [resolvable:$true] %s56_s27  ;;  %s72_s28 = int_to_ptr.vmem [resolvable:$true] %s71_s28 }
   0xc   :  { %62 = dma.hbm_to_vmem [thread:$0]  %s55_s23, 1024, %s57_s27, [#allocation6], %s748_s17, %s748_s17, %s749_s18  }
   0xd   :  { %77 = dma.hbm_to_vmem [thread:$0]  %s70_s25, 1024, %s72_s28, [#allocation9], %s748_s17, %s748_s17, %s749_s18  }
   0xe   :  { %739 = dma.done.wait [#allocation3], 1024  }
   0xf   :  { %740 = vsyncadd [#allocation3], 4294966272 }
  0x10   :  { %741 = dma.done.wait [#allocation6], 2048  }
  0x11   :  { %742 = vsyncadd [#allocation6], 4294965248 }
  0x12   :  { %743 = dma.done.wait [#allocation9], 1024  }
  0x13   :  { %744 = vsyncadd [#allocation9], 4294966272  ;;  %v583_v0 = vld [vmem:[#allocation2 + $0x38] sm:$0xff]  ;;  %v582_v1 = vld [vmem:[#allocation2 + $0x30] sm:$0xff]  ;;  %s753_s13 = smov [#allocation10]   ;;  %s436_s17 = sshll.u32 %s843_s9, 4  ;;  %s437_s17 = int_to_ptr.hbm [resolvable:$true] %s436_s17 }
  0x14   :  { %166 = vmatpush.bf16.msra.mxu0 %v583_v0  ;;  %v591_v2 = vld [vmem:[#allocation5 + $0x38] sm:$0xff]  ;;  %v590_v3 = vld [vmem:[#allocation5 + $0x30] sm:$0xff]  ;;  %v581_v4 = vld [vmem:[#allocation2 + $0x28] sm:$0xff]  ;;  %s434_s14 = sshll.u32 %s753_s13, 4  ;;  %s435_s14 = int_to_ptr.vmem [resolvable:$true] %s434_s14 }
  0x15   :  { %249 = vmatpush.bf16.msra.mxu1 %v591_v2  ;;  %v589_v5 = vld [vmem:[#allocation5 + $0x28] sm:$0xff]  ;;  %v580_v6 = vld [vmem:[#allocation2 + $0x20] sm:$0xff]  ;;  %v579_v8 = vld [vmem:[#allocation2 + $0x18] sm:$0xff] }
  0x16   :  { %v588_v7 = vld [vmem:[#allocation5 + $0x20] sm:$0xff]  ;;  %v587_v9 = vld [vmem:[#allocation5 + $0x18] sm:$0xff]  ;;  %v578_v10 = vld [vmem:[#allocation2 + $0x10] sm:$0xff] }
  0x17   :  { %v586_v11 = vld [vmem:[#allocation5 + $0x10] sm:$0xff]  ;;  %v577_v12 = vld [vmem:[#allocation2 + $0x8] sm:$0xff]  ;;  %v576_v13 = vld [vmem:[#allocation2] sm:$0xff] }
  0x18   :  { %167 = vmatpush.bf16.msra.mxu0 %v582_v1  ;;  %v96_v14 = vld [vmem:[%s834_s0] sm:$0xff]  ;;  %v585_v16 = vld [vmem:[#allocation5 + $0x8] sm:$0xff]  ;;  %v599_v18 = vld [vmem:[#allocation7 + $0x38] sm:$0xff] }
  0x19   :  { %250 = vmatpush.bf16.msra.mxu1 %v590_v3  ;;  %v97_v15 = vpack.c.bf16 %v96_v14, %v96_v14  ;;  %v584_v17 = vld [vmem:[#allocation5] sm:$0xff]  ;;  %332 = vmatpush.bf16.msra.mxu2 %v599_v18  ;;  %v598_v19 = vld [vmem:[#allocation7 + $0x30] sm:$0xff]  ;;  %v597_v20 = vld [vmem:[#allocation7 + $0x28] sm:$0xff] }
  0x1a   :  { %v596_v21 = vld [vmem:[#allocation7 + $0x20] sm:$0xff]  ;;  %v595_v22 = vld [vmem:[#allocation7 + $0x18] sm:$0xff]  ;;  %v594_v23 = vld [vmem:[#allocation7 + $0x10] sm:$0xff] }
  0x1b   :  { %v615_v24 = vld [vmem:[%s836_s2] ss:$0 sm:$0xff]  ;;  %v593_v30 = vld [vmem:[#allocation7 + $0x8] sm:$0xff]  ;;  %v607_v32 = vld [vmem:[#allocation8 + $0x38] sm:$0xff] }
  0x1c   :  { %168 = vmatpush.bf16.msra.mxu0 %v581_v4  ;;  %v592_v31 = vld [vmem:[#allocation7] sm:$0xff]  ;;  %415 = vmatpush.bf16.msra.mxu3 %v607_v32  ;;  %v606_v33 = vld [vmem:[#allocation8 + $0x30] sm:$0xff]  ;;  %v605_v34 = vld [vmem:[#allocation8 + $0x28] sm:$0xff] }
  0x1d   :  { %251 = vmatpush.bf16.msra.mxu1 %v589_v5  ;;  %333 = vmatpush.bf16.msra.mxu2 %v598_v19  ;;  %v604_v35 = vld [vmem:[#allocation8 + $0x20] sm:$0xff]  ;;  %v603_v36 = vld [vmem:[#allocation8 + $0x18] sm:$0xff]  ;;  %v602_v37 = vld [vmem:[#allocation8 + $0x10] sm:$0xff] }
  0x1e   :  { %v616_v38 = vld [vmem:[%s838_s4] ss:$0 sm:$0xff]  ;;  %v601_v44 = vld [vmem:[#allocation8 + $0x8] sm:$0xff] }
  0x1f   :  { %v600_v45 = vld [vmem:[#allocation8] sm:$0xff] }
  0x20   :  { %169 = vmatpush.bf16.msra.mxu0 %v580_v6  ;;  %416 = vmatpush.bf16.msra.mxu3 %v606_v33  ;;  %v617_v46 = vld [vmem:[%s840_s6] ss:$0 sm:$0xff] }
  0x21   :  { %252 = vmatpush.bf16.msra.mxu1 %v588_v7  ;;  %334 = vmatpush.bf16.msra.mxu2 %v597_v20  ;;  %v618_v52 = vld [vmem:[%s842_s8] ss:$0 sm:$0xff] }
  0x24   :  { %170 = vmatpush.bf16.msra.mxu0 %v579_v8  ;;  %417 = vmatpush.bf16.msra.mxu3 %v605_v34 }
  0x25   :  { %253 = vmatpush.bf16.msra.mxu1 %v587_v9  ;;  %335 = vmatpush.bf16.msra.mxu2 %v596_v21 }
  0x28   :  { %171 = vmatpush.bf16.msra.mxu0 %v578_v10  ;;  %418 = vmatpush.bf16.msra.mxu3 %v604_v35 }
  0x29   :  { %254 = vmatpush.bf16.msra.mxu1 %v586_v11  ;;  %336 = vmatpush.bf16.msra.mxu2 %v595_v22 }
  0x2c   :  { %172 = vmatpush.bf16.msra.mxu0 %v577_v12  ;;  %419 = vmatpush.bf16.msra.mxu3 %v603_v36 }
  0x2d   :  { %255 = vmatpush.bf16.msra.mxu1 %v585_v16  ;;  %337 = vmatpush.bf16.msra.mxu2 %v594_v23 }
  0x30   :  { %173 = vmatpush.bf16.msra.mxu0 %v576_v13  ;;  %420 = vmatpush.bf16.msra.mxu3 %v602_v37 }
  0x31   :  { %256 = vmatpush.bf16.msra.mxu1 %v584_v17  ;;  %338 = vmatpush.bf16.msra.mxu2 %v593_v30 }
  0x33   :  { %174 = vmatmul.bf16.vlgmr.msra.gmra.mxu0 %v97_v15 }
  0x34   :  { %421 = vmatpush.bf16.msra.mxu3 %v601_v44 }
  0x35   :  { %339 = vmatpush.bf16.msra.mxu2 %v592_v31 }
  0x38   :  { %422 = vmatpush.bf16.msra.mxu3 %v600_v45 }
  0xb0   :  { %v175_v25 = vpop.f32.mrf.mxu0 }
  0xb1   :  { %v176_v26 = vadd.f32 %v615_v24, %v175_v25 }
  0xb3   :  { %v179_v27 = vmax.f32 %v176_v26, 0.0 }
  0xb5   :  { %v180_v28 = vpack.c.bf16 %v179_v27, %v179_v27 }
  0xb7   :  { %257 = vmatmul.bf16.vlgmr.msra.gmra.mxu1 %v180_v28 }
  0xb8   :  { %v177_v29 = vpop.f32.mrf.mxu0 }
 0x134   :  { %v258_v39 = vpop.f32.mrf.mxu1 }
 0x135   :  { %v259_v40 = vadd.f32 %v616_v38, %v258_v39 }
 0x137   :  { %v262_v41 = vmax.f32 %v259_v40, 0.0 }
 0x139   :  { %v263_v42 = vpack.c.bf16 %v262_v41, %v262_v41 }
 0x13b   :  { %340 = vmatmul.bf16.vlgmr.msra.gmra.mxu2 %v263_v42 }
 0x13c   :  { %v260_v43 = vpop.f32.mrf.mxu1 }
 0x1be   :  { %v341_v47 = vpop.f32.mrf.mxu2 }
 0x1bf   :  { %v342_v48 = vadd.f32 %v617_v46, %v341_v47 }
 0x1c1   :  { %v345_v49 = vmax.f32 %v342_v48, 0.0 }
 0x1c3   :  { %v346_v50 = vpack.c.bf16 %v345_v49, %v345_v49 }
 0x1c5   :  { %423 = vmatmul.bf16.vlgmr.msra.gmra.mxu3 %v346_v50 }
 0x1c6   :  { %v343_v51 = vpop.f32.mrf.mxu2 }
 0x248   :  { %v424_v53 = vpop.f32.mrf.mxu3 }
 0x249   :  { %v425_v54 = vadd.f32 %v618_v52, %v424_v53 }
 0x24b   :  { %428 = vst [vmem:[#allocation10] sm:$0xff] %v425_v54 }
 0x24c   :  { %439 = dma.vmem_to_hbm [thread:$0]  %s435_s14, 128, %s437_s17, [#allocation4]  }
 0x250   :  { %v426_v55 = vpop.f32.mrf.mxu3 }
 0x251   :  { %745 = dma.done.wait [#allocation4], 128  }
 0x252   :  { %746 = vsyncadd [#allocation4], 4294967168 }
 0x253   :  { %444 = vsyncpa [#allocation3], 1 }
 0x254   :  { %445 = vsyncpa [#allocation6], 1 }
 0x255   :  { %446 = vsyncpa [#allocation9], 1 }
 0x256   :  { %447 = vsyncpa [#allocation4], 1 }

</bundles_post_ra>
